<compile_context>
chip_gen: v5e
topology: v5e:2x2
jax: 0.10.0
libtpu: 0.0.40
codegen_flags: <defaults>
</compile_context>

<pallas_src>
import jax
import jax.numpy as jnp
from jax.experimental import pallas as pl
from jax.experimental.pallas import tpu as pltpu

HEAD_N = 128  # lane-dense fused head width (action logits | value | zero padding)
_HP = jax.lax.Precision.HIGHEST


def ppo_kernel(obs_ref, w_ref, b_ref, out_ref):
    # obs_ref: (TB, in_dim) f32; w_ref: (in_dim, HEAD_N) f32; b_ref: (1, HEAD_N) f32.
    # Single MXU matmul with f32 accumulation + broadcast bias add;
    # one unmasked lane-dense (TB, 128) store.
    out_ref[...] = (jnp.dot(obs_ref[...], w_ref[...],
                            preferred_element_type=jnp.float32) + b_ref[...])


def prepare_params(params):
    """One-time parameter prep (hoisted out of the per-call forward).

    params: 6 (W_in_out, b_1_out) f32 pairs for
    (input_layer, hidden1, hidden2, hidden3, action_output, value_output).

    The module applies no nonlinearity between layers, so the whole network is
    one affine map.  Returns:
      w_eff: (in_dim, HEAD_N) f32 = W0 @ W1 @ W2 @ W3 @ [Wa | Wv | 0]
      b_eff: (1, HEAD_N)  f32 with all biases folded through the chain.
    """
    (w0, b0), (w1, b1), (w2, b2), (w3, b3), (wa, ba), (wv, bv) = params
    A = wa.shape[1]
    assert A + 1 <= HEAD_N
    hid = wa.shape[0]
    # Fuse the two heads into one lane-dense (hid, 128) weight / (1, 128) bias.
    w_head = (jnp.zeros((hid, HEAD_N), jnp.float32)
              .at[:, :A].set(wa).at[:, A:A + 1].set(wv))
    b_head = (jnp.zeros((1, HEAD_N), jnp.float32)
              .at[:, :A].set(ba).at[:, A:A + 1].set(bv))
    # Collapse the affine chain in full f32 precision.
    w_eff, b_eff = w0, b0
    for w, b in ((w1, b1), (w2, b2), (w3, b3), (w_head, b_head)):
        w_eff = jnp.dot(w_eff, w, precision=_HP)
        b_eff = jnp.dot(b_eff, w, precision=_HP) + b
    return w_eff, b_eff


def ppo_forward(obs, w_eff, b_eff, num_actions, *, tb=512):
    """obs: (B, in_dim) f32. Returns (action_output (B, A), value_output (B, 1))."""
    B, in_dim = obs.shape
    A = num_actions

    # --- batch tiling ---
    if B <= 256:
        # Single tile, padded to a multiple of 16 rows (sublane aligned).
        TB = max(16, ((B + 15) // 16) * 16)
    else:
        # Cap the tile at `tb` but keep >= 2 grid steps so a 2-TensorCore chip
        # (v7x) uses both cores via the "parallel" grid axis.
        TB = min(tb, max(256, ((pl.cdiv(B, 2) + 255) // 256) * 256))
    B_pad = pl.cdiv(B, TB) * TB
    obs_p = obs if B_pad == B else jnp.pad(obs, ((0, B_pad - B), (0, 0)))
    grid = (B_pad // TB,)

    flops = 2 * B_pad * in_dim * HEAD_N
    bytes_accessed = 4 * (B_pad * in_dim + in_dim * HEAD_N + HEAD_N
                          + B_pad * HEAD_N)

    out = pl.pallas_call(
        ppo_kernel,
        out_shape=jax.ShapeDtypeStruct((B_pad, HEAD_N), jnp.float32),
        grid_spec=pltpu.PrefetchScalarGridSpec(
            num_scalar_prefetch=0,
            grid=grid,
            in_specs=[
                pl.BlockSpec((TB, in_dim), lambda i: (i, 0)),
                # Constant block index: effective weight/bias stay VMEM-resident.
                pl.BlockSpec(w_eff.shape, lambda i: (0, 0)),
                pl.BlockSpec(b_eff.shape, lambda i: (0, 0)),
            ],
            out_specs=pl.BlockSpec((TB, HEAD_N), lambda i: (i, 0)),
        ),
        compiler_params=pltpu.CompilerParams(
            dimension_semantics=("parallel",)),
        cost_estimate=pl.CostEstimate(
            flops=flops, transcendentals=0, bytes_accessed=bytes_accessed),
    )(obs_p, w_eff, b_eff)

    act = out[:B, :A]
    val = out[:B, A:A + 1]
    return act, val


def init_linear(key, fan_in, fan_out):
    """Deterministic init; weight stored as (in, out), bias as (1, out)."""
    kw, kb = jax.random.split(key)
    bound = 1.0 / jnp.sqrt(fan_in)
    w = jax.random.uniform(kw, (fan_in, fan_out), jnp.float32, -bound, bound)
    b = jax.random.uniform(kb, (1, fan_out), jnp.float32, -bound, bound)
    return w, b


def reference_forward(obs, params):
    """Pure-JAX f32 layer-by-layer reference matching the PyTorch forward."""
    x = obs
    for w, b in params[:4]:
        x = jnp.dot(x, w, precision=_HP) + b
    act = jnp.dot(x, params[4][0], precision=_HP) + params[4][1]
    val = jnp.dot(x, params[5][0], precision=_HP) + params[5][1]
    return act, val


if __name__ == "__main__":
    input_size = 32
    number_of_actions = 4
    batch = 2

    key = jax.random.PRNGKey(0)
    keys = jax.random.split(key, 7)

    # Layer sizes mirror the PyTorch module:
    # input_layer(in,256) -> hidden1(256,256) -> hidden2(256,512) -> hidden3(512,512)
    # action_output(512, A), value_output(512, 1)
    params = [
        init_linear(keys[0], input_size, 256),
        init_linear(keys[1], 256, 256),
        init_linear(keys[2], 256, 512),
        init_linear(keys[3], 512, 512),
        init_linear(keys[4], 512, number_of_actions),
        init_linear(keys[5], 512, 1),
    ]

    # One-time parameter prep (hoisted out of the per-call forward).
    w_eff, b_eff = prepare_params(params)
    jax.block_until_ready((w_eff, b_eff))

    # Small-batch (padded single-tile) path.
    obs = jax.random.normal(keys[6], (batch, input_size), jnp.float32)
    act_out, val_out = ppo_forward(obs, w_eff, b_eff, number_of_actions)
    jax.block_until_ready((act_out, val_out))

    act_ref, val_ref = reference_forward(obs, params)
    assert act_out.shape == (batch, number_of_actions)
    assert val_out.shape == (batch, 1)
    assert jnp.allclose(act_out, act_ref, atol=3e-3, rtol=3e-3)
    assert jnp.allclose(val_out, val_ref, atol=3e-3, rtol=3e-3)

    # Batch-tiled grid path (B=512 -> TB=256, grid=(2,): both v7x cores busy).
    obs_big = jax.random.normal(keys[6], (512, input_size), jnp.float32)
    act_b, val_b = ppo_forward(obs_big, w_eff, b_eff, number_of_actions)
    jax.block_until_ready((act_b, val_b))
    act_br, val_br = reference_forward(obs_big, params)
    assert act_b.shape == (512, number_of_actions)
    assert val_b.shape == (512, 1)
    assert jnp.allclose(act_b, act_br, atol=3e-3, rtol=3e-3)
    assert jnp.allclose(val_b, val_br, atol=3e-3, rtol=3e-3)

    print("KERNEL_OK")
</pallas_src>

<mosaic_0001>
module attributes {stable_mosaic.version = 11 : i64} {
  func.func @ppo_kernel(%arg0: i32, %arg1: memref<16x32xf32, #tpu.memory_space<vmem>>, %arg2: memref<32x128xf32, #tpu.memory_space<vmem>>, %arg3: memref<1x128xf32, #tpu.memory_space<vmem>>, %arg4: memref<16x128xf32, #tpu.memory_space<vmem>>) attributes {dimension_semantics = [#tpu.dimension_semantics<parallel>], iteration_bounds = array<i64: 1>, scalar_prefetch = 0 : i64, scratch_operands = 0 : i64, tpu.core_type = #tpu.core_type<tc>, window_params = [{transform_indices = @transform_0, window_bounds = array<i64: 16, 32>}, {pipeline_mode = #tpu.pipeline_mode<synchronous>, transform_indices = @transform_1, window_bounds = array<i64: 32, 128>}, {pipeline_mode = #tpu.pipeline_mode<synchronous>, transform_indices = @transform_2, window_bounds = array<i64: 1, 128>}, {transform_indices = @transform_3, window_bounds = array<i64: 16, 128>}]} {
    %c0 = arith.constant 0 : index
    %c0_0 = arith.constant 0 : index
    %0 = vector.load %arg1[%c0, %c0_0] : memref<16x32xf32, #tpu.memory_space<vmem>>, vector<16x32xf32>
    %c0_1 = arith.constant 0 : index
    %c0_2 = arith.constant 0 : index
    %1 = vector.load %arg2[%c0_1, %c0_2] : memref<32x128xf32, #tpu.memory_space<vmem>>, vector<32x128xf32>
    %cst = arith.constant dense<0.000000e+00> : vector<16x128xf32>
    %2 = tpu.matmul %0, %1, %cst {dimension_numbers = #tpu.dot_dimension_numbers<[1], [0], [0], [1], [0, 0, 1, 1], [], []>} : vector<16x32xf32>, vector<32x128xf32>, vector<16x128xf32> -> vector<16x128xf32>
    %c0_3 = arith.constant 0 : index
    %c0_4 = arith.constant 0 : index
    %3 = vector.load %arg3[%c0_3, %c0_4] : memref<1x128xf32, #tpu.memory_space<vmem>>, vector<1x128xf32>
    %4 = vector.broadcast %3 : vector<1x128xf32> to vector<16x128xf32>
    %5 = arith.addf %2, %4 : vector<16x128xf32>
    %c0_5 = arith.constant 0 : index
    %c0_6 = arith.constant 0 : index
    %6 = vector.load %arg4[%c0_5, %c0_6] : memref<16x128xf32, #tpu.memory_space<vmem>>, vector<16x128xf32>
    tpu.vector_store %arg4[%c0_5, %c0_6], %5 {strides = array<i32>} : memref<16x128xf32, #tpu.memory_space<vmem>>, vector<16x128xf32>,
    return
  }
  func.func @transform_0(%arg0: i32) -> (i32, i32) {
    %c0_i32 = arith.constant 0 : i32
    %c0_i32_0 = arith.constant 0 : i32
    return %arg0, %c0_i32 : i32, i32
  }
  func.func @transform_1(%arg0: i32) -> (i32, i32) {
    %c0_i32 = arith.constant 0 : i32
    %c0_i32_0 = arith.constant 0 : i32
    %c0_i32_1 = arith.constant 0 : i32
    return %c0_i32, %c0_i32_0 : i32, i32
  }
  func.func @transform_2(%arg0: i32) -> (i32, i32) {
    %c0_i32 = arith.constant 0 : i32
    %c0_i32_0 = arith.constant 0 : i32
    %c0_i32_1 = arith.constant 0 : i32
    return %c0_i32, %c0_i32_0 : i32, i32
  }
  func.func @transform_3(%arg0: i32) -> (i32, i32) {
    %c0_i32 = arith.constant 0 : i32
    %c0_i32_0 = arith.constant 0 : i32
    return %arg0, %c0_i32 : i32, i32
  }
}

</mosaic_0001>

<bundles_post_ra>
// kernel: tpu_custom_call.1
= control target key start
LH: loop header
LB: loop body
LE: loop exit
PB: predicated region body
PF: predicated region fallthrough
CT: control target
= control target key end

     0   :  { %8 = vsyncpa [#allocation3], 0  ;;  %s245_s0 = inlined_call_operand.hbm [shape: f32[16,32], index: 0, kind: input, shape index: {}]   ;;  %s246_s1 = inlined_call_operand.hbm [shape: f32[32,128], index: 1, kind: input, shape index: {}]   ;;  %s247_s2 = inlined_call_operand.vmem [shape: f32[1,128], index: 2, kind: input, shape index: {}]   ;;  %s248_s3 = inlined_call_operand.hbm [shape: f32[16,128], index: 3, kind: output, shape index: {}]  }
   0x1   :  { %9 = vsyncpa [#allocation6], 0 }
   0x2   :  { %10 = vsyncpa [#allocation4], 0  ;;  %s15_s14 = sshll.u32 %s245_s0, 4  ;;  %s199_s15 = smov [#allocation2]   ;;  %s16_s14 = int_to_ptr.hbm [resolvable:$true] %s15_s14 }
   0x3   :  { %s17_s16 = sshll.u32 %s199_s15, 4  ;;  %s28_s19 = sshll.u32 %s246_s1, 4  ;;  %s18_s16 = int_to_ptr.vmem [resolvable:$true] %s17_s16  ;;  %s29_s19 = int_to_ptr.hbm [resolvable:$true] %s28_s19 }
   0x4   :  { %s200_s20 = smov 128   ;;  %s201_s21 = smov 8  }
   0x5   :  { %23 = dma.hbm_to_vmem [thread:$0]  %s16_s14, 256, %s18_s16, [#allocation3], %s200_s20, %s200_s20, %s201_s21  }
   0x6   :  { %s202_s22 = smov [#allocation5]  }
   0x7   :  { %s30_s23 = sshll.u32 %s202_s22, 4  ;;  %s31_s23 = int_to_ptr.vmem [resolvable:$true] %s30_s23 }
   0x8   :  { %36 = dma.hbm_to_vmem [thread:$0]  %s29_s19, 512, %s31_s23, [#allocation6], %s200_s20, %s200_s20, %s201_s21  }
   0x9   :  { %193 = dma.done.wait [#allocation3], 256  }
   0xa   :  { %194 = vsyncadd [#allocation3], 4294967040 }
   0xb   :  { %195 = dma.done.wait [#allocation6], 512  }
   0xc   :  { %196 = vsyncadd [#allocation6], 4294966784  ;;  %v52_v0 = vld [vmem:[#allocation5 + $0x18] sm:$0xff]  ;;  %v51_v1 = vld [vmem:[#allocation5 + $0x10] sm:$0xff]  ;;  %vm57_vm0 = vcmask 261120   ;;  %s203_s24 = smov [#allocation7]  }
   0xd   :  { %76 = vmatpush.msra.mxu0 %v52_v0  ;;  %111 = vmatpush.msra.mxu1 %v52_v0  ;;  %v50_v2 = vld [vmem:[#allocation5 + $0x8] sm:$0xff]  ;;  %v49_v3 = vld [vmem:[#allocation5] sm:$0xff]  ;;  %v47_v4 = vld [vmem:[#allocation2] sm:$0xff]  ;;  %s93_s25 = sshll.u32 %s203_s24, 4  ;;  %s95_s28 = sshll.u32 %s248_s3, 4  ;;  %s94_s25 = int_to_ptr.vmem [resolvable:$true] %s93_s25  ;;  %s96_s28 = int_to_ptr.hbm [resolvable:$true] %s95_s28 }
   0xe   :  { %v48_v5 = vld [vmem:[#allocation2 + $0x8] sm:$0xff]  ;;  %v120_v6 = vld [vmem:[%s247_s2] ss:$0 sm:$0xff] }
   0xf   :  { %77 = vmatpush.msra.mxu0 %v51_v1  ;;  %112 = vmatpush.msra.mxu1 %v51_v1 }
  0x11   :  { %78 = vmatpush.msra.mxu0 %v50_v2  ;;  %113 = vmatpush.msra.mxu1 %v50_v2 }
  0x13   :  { %79 = vmatpush.msra.mxu0 %v49_v3  ;;  %114 = vmatpush.msra.mxu1 %v49_v3 }
  0x14   :  { %109 = vmatmul.msk.f32.vlgmr.msra.gmra.mxu0 %vm57_vm0, %v47_v4  ;;  %110 = vmatmul.msk.f32.vlgmr.msra.gmra.mxu1 %vm57_vm0, %v48_v5 }
  0x91   :  { %v81_v7 = vpop.f32.mrf.mxu0  ;;  %v84_v8 = vpop.f32.mrf.mxu1 }
  0x92   :  { %v82_v9 = vadd.f32 %v120_v6, %v81_v7  ;;  %v85_v10 = vadd.f32 %v120_v6, %v84_v8 }
  0x94   :  { %87 = vst [vmem:[#allocation7] sm:$0xff] %v82_v9 }
  0x95   :  { %88 = vst [vmem:[#allocation7 + $0x8] sm:$0xff] %v85_v10 }
  0x96   :  { %101 = dma.vmem_to_hbm [thread:$0]  %s94_s25, 256, %s96_s28, [#allocation4], %s200_s20, %s200_s20, %s201_s21  }
  0x97   :  { %197 = dma.done.wait [#allocation4], 256  }
  0x98   :  { %198 = vsyncadd [#allocation4], 4294967040 }
  0x99   :  { %106 = vsyncpa [#allocation3], 1 }
  0x9a   :  { %107 = vsyncpa [#allocation6], 1 }
  0x9b   :  { %108 = vsyncpa [#allocation4], 1 }

</bundles_post_ra>
